<compile_context>
chip_gen: v5e
topology: v5e:2x2
jax: 0.10.0
libtpu: 0.0.40
codegen_flags: <defaults>
</compile_context>

<pallas_src>
import functools

import jax
import jax.numpy as jnp
from jax.experimental import pallas as pl
from jax.experimental.pallas import tpu as pltpu


def _round_up(x: int, m: int) -> int:
    return ((x + m - 1) // m) * m


def _linear_kernel(x_ref, w_ref, b_ref, o_ref, *, apply_sigmoid: bool,
                   approx_sigmoid: bool):
    # x_ref: (tm, K) streamed; w_ref: (K, N) resident; b_ref: (1, N) resident;
    # o_ref: (tm, N).  Accumulate in f32 on the MXU regardless of input dtype.
    y = jnp.dot(x_ref[...], w_ref[...], preferred_element_type=jnp.float32)
    y = y + b_ref[...]                       # f32 epilogue (safe on v5e VPU)
    if apply_sigmoid:
        e = jnp.exp(-y)                      # EUP
        if approx_sigmoid:
            y = pl.reciprocal(1.0 + e, approx=True)   # EUP vrcp — VALU stays free
        else:
            y = 1.0 / (1.0 + e)              # exact divide (VALU)
    o_ref[...] = y.astype(o_ref.dtype)


def model_linear_forward(
    x,
    w_t,
    b,
    *,
    tm: int = 1024,             # 1024 default; 2048 also fine with the auto VMEM limit
    apply_sigmoid: bool = False,
    approx_sigmoid: bool = True,
    out_dtype=jnp.float32,      # pass jnp.bfloat16 to halve output writeback bytes
    core_parallel: bool = False,  # v7x: shard the batch axis across both TCs
    vmem_limit_bytes=None,
):
    """y = x @ w_t + b  (== torch.nn.Linear(n_feature, n_label), w_t = weight.T).

    Pass `x` already in bf16 to halve streamed HBM bytes (all generations,
    including v5e); the weight is cast to x's dtype in the wrapper (tiny), and
    accumulation + bias/sigmoid stay in f32.
    """
    B, K = x.shape
    K2, N = w_t.shape
    assert K == K2, "feature dim mismatch"
    b = jnp.asarray(b).reshape(1, N).astype(jnp.float32)

    # Stream the weight in the activation dtype; never touch the big activation.
    if w_t.dtype != x.dtype:
        w_t = w_t.astype(x.dtype)

    # Sublane-align the row tile: 16 for 16-bit dtypes (bf16 packing), else 8.
    sub = 16 if (jnp.dtype(x.dtype).itemsize == 2
                 or jnp.dtype(out_dtype).itemsize == 2) else 8
    tm = _round_up(min(tm, _round_up(B, sub)), sub)
    grid = (pl.cdiv(B, tm),)    # last block may be partial -> masked, no padding

    if vmem_limit_bytes is None:
        x_bytes = jnp.dtype(x.dtype).itemsize
        o_bytes = jnp.dtype(out_dtype).itemsize
        need = (2 * tm * K * x_bytes            # double-buffered x tile
                + 2 * tm * N * o_bytes          # double-buffered out tile
                + 2 * (K * N * x_bytes + N * 4))  # weight + bias buffers
        # Floor at 32 MiB (lifts v5e's 16 MiB default), cap at 48 MiB (v7x-safe).
        vmem_limit_bytes = min(max(32 << 20, int(1.25 * need) + (2 << 20)), 48 << 20)

    kernel = functools.partial(_linear_kernel,
                               apply_sigmoid=apply_sigmoid,
                               approx_sigmoid=approx_sigmoid)
    batch_sem = pltpu.CORE_PARALLEL if core_parallel else "parallel"

    return pl.pallas_call(
        kernel,
        out_shape=jax.ShapeDtypeStruct((B, N), out_dtype),
        grid_spec=pltpu.PrefetchScalarGridSpec(
            num_scalar_prefetch=0,
            grid=grid,
            in_specs=[
                pl.BlockSpec((tm, K), lambda i: (i, 0)),   # streamed x rows
                # Constant index_map -> weight/bias stay resident across the grid
                # (Pallas does not re-DMA an unchanged block).  pl.Buffered(1)
                # would drop their second buffer; skipped — saving is ~0.4 MiB here.
                pl.BlockSpec((K, N), lambda i: (0, 0)),    # weight, resident
                pl.BlockSpec((1, N), lambda i: (0, 0)),    # bias, resident
            ],
            out_specs=pl.BlockSpec((tm, N), lambda i: (i, 0)),
        ),
        compiler_params=pltpu.CompilerParams(
            dimension_semantics=(batch_sem,),
            vmem_limit_bytes=vmem_limit_bytes,
        ),
    )(x, w_t, b)


def predict_proba(x, w_t, b, **kw):
    # Sigmoid fused into the kernel epilogue (no second HBM pass over the output).
    return model_linear_forward(x, w_t, b, apply_sigmoid=True, **kw)


if __name__ == "__main__":
    n_feature, n_label = 512, 166

    key = jax.random.PRNGKey(0)
    kx, kx2, kx3, kw, kb = jax.random.split(key, 5)

    # Deterministic parameters (shapes match torch.nn.Linear(512, 166)).
    bound = 1.0 / (n_feature ** 0.5)
    weight = jax.random.uniform(kw, (n_label, n_feature), jnp.float32, -bound, bound)
    bias = jax.random.uniform(kb, (n_label,), jnp.float32, -bound, bound)
    w_t = jnp.asarray(weight.T)          # (n_feature, n_label)
    b_row = bias.reshape(1, n_label)     # (1, n_label)

    # --- f32 forward, batch = 8 (exact block) ---
    x = jax.random.normal(kx, (8, n_feature), jnp.float32)
    y = jax.block_until_ready(model_linear_forward(x, w_t, b_row))
    y_ref = x @ w_t + b_row
    assert y.shape == (8, n_label)
    assert jnp.allclose(y, y_ref, atol=1e-4, rtol=1e-4), "linear mismatch vs reference"

    # --- ragged batch = 13: exercises the partial-last-block path (no pad/slice) ---
    x13 = jax.random.normal(kx2, (13, n_feature), jnp.float32)
    y13 = jax.block_until_ready(model_linear_forward(x13, w_t, b_row))
    assert y13.shape == (13, n_label)
    assert jnp.allclose(y13, x13 @ w_t + b_row, atol=1e-4, rtol=1e-4), "ragged-batch mismatch"

    # --- predict_proba with fused EUP sigmoid (approx reciprocal) ---
    p = jax.block_until_ready(predict_proba(x, w_t, b_row))
    p_ref = jax.nn.sigmoid(y_ref)
    assert p.shape == (8, n_label)
    assert jnp.allclose(p, p_ref, atol=5e-3, rtol=5e-3), "approx sigmoid out of tolerance"

    # --- exact-sigmoid path ---
    p_exact = jax.block_until_ready(predict_proba(x, w_t, b_row, approx_sigmoid=False))
    assert jnp.allclose(p_exact, p_ref, atol=1e-4, rtol=1e-4), "exact sigmoid mismatch"

    # --- bf16 streaming + bf16 output (caller supplies bf16 x; no wrapper cast of x) ---
    x32 = jax.random.normal(kx3, (32, n_feature), jnp.float32)
    y32_ref = x32 @ w_t + b_row
    x32_bf = x32.astype(jnp.bfloat16)
    y_bf = jax.block_until_ready(
        model_linear_forward(x32_bf, w_t, b_row, out_dtype=jnp.bfloat16))
    assert y_bf.dtype == jnp.bfloat16 and y_bf.shape == (32, n_label)
    assert jnp.allclose(y_bf.astype(jnp.float32), y32_ref, atol=5e-2, rtol=5e-2), \
        "bf16 path out of tolerance"

    print("KERNEL_OK")
</pallas_src>

<mosaic_0001>
module attributes {stable_mosaic.version = 11 : i64} {
  func.func @_linear_kernel(%arg0: i32, %arg1: memref<8x512xf32, #tpu.memory_space<vmem>>, %arg2: memref<512x166xf32, #tpu.memory_space<vmem>>, %arg3: memref<1x166xf32, #tpu.memory_space<vmem>>, %arg4: memref<8x166xf32, #tpu.memory_space<vmem>>) attributes {dimension_semantics = [#tpu.dimension_semantics<parallel>], iteration_bounds = array<i64: 1>, scalar_prefetch = 0 : i64, scratch_operands = 0 : i64, tpu.core_type = #tpu.core_type<tc>, window_params = [{transform_indices = @transform_0, window_bounds = array<i64: 8, 512>}, {pipeline_mode = #tpu.pipeline_mode<synchronous>, transform_indices = @transform_1, window_bounds = array<i64: 512, 166>}, {pipeline_mode = #tpu.pipeline_mode<synchronous>, transform_indices = @transform_2, window_bounds = array<i64: 1, 166>}, {transform_indices = @transform_3, window_bounds = array<i64: 8, 166>}]} {
    %c0 = arith.constant 0 : index
    %c0_0 = arith.constant 0 : index
    %0 = vector.load %arg1[%c0, %c0_0] : memref<8x512xf32, #tpu.memory_space<vmem>>, vector<8x512xf32>
    %c0_1 = arith.constant 0 : index
    %c0_2 = arith.constant 0 : index
    %1 = vector.load %arg2[%c0_1, %c0_2] : memref<512x166xf32, #tpu.memory_space<vmem>>, vector<512x166xf32>
    %cst = arith.constant dense<0.000000e+00> : vector<8x166xf32>
    %2 = tpu.matmul %0, %1, %cst {dimension_numbers = #tpu.dot_dimension_numbers<[1], [0], [0], [1], [0, 0, 1, 1], [], []>} : vector<8x512xf32>, vector<512x166xf32>, vector<8x166xf32> -> vector<8x166xf32>
    %c0_3 = arith.constant 0 : index
    %c0_4 = arith.constant 0 : index
    %3 = vector.load %arg3[%c0_3, %c0_4] : memref<1x166xf32, #tpu.memory_space<vmem>>, vector<1x166xf32>
    %4 = vector.broadcast %3 : vector<1x166xf32> to vector<8x166xf32>
    %5 = arith.addf %2, %4 : vector<8x166xf32>
    %c0_5 = arith.constant 0 : index
    %c0_6 = arith.constant 0 : index
    %6 = vector.load %arg4[%c0_5, %c0_6] : memref<8x166xf32, #tpu.memory_space<vmem>>, vector<8x166xf32>
    tpu.vector_store %arg4[%c0_5, %c0_6], %5 {strides = array<i32>} : memref<8x166xf32, #tpu.memory_space<vmem>>, vector<8x166xf32>,
    return
  }
  func.func @transform_0(%arg0: i32) -> (i32, i32) {
    %c0_i32 = arith.constant 0 : i32
    %c0_i32_0 = arith.constant 0 : i32
    return %arg0, %c0_i32 : i32, i32
  }
  func.func @transform_1(%arg0: i32) -> (i32, i32) {
    %c0_i32 = arith.constant 0 : i32
    %c0_i32_0 = arith.constant 0 : i32
    %c0_i32_1 = arith.constant 0 : i32
    return %c0_i32, %c0_i32_0 : i32, i32
  }
  func.func @transform_2(%arg0: i32) -> (i32, i32) {
    %c0_i32 = arith.constant 0 : i32
    %c0_i32_0 = arith.constant 0 : i32
    %c0_i32_1 = arith.constant 0 : i32
    return %c0_i32, %c0_i32_0 : i32, i32
  }
  func.func @transform_3(%arg0: i32) -> (i32, i32) {
    %c0_i32 = arith.constant 0 : i32
    %c0_i32_0 = arith.constant 0 : i32
    return %arg0, %c0_i32 : i32, i32
  }
}

</mosaic_0001>

<bundles_post_ra>
// kernel: tpu_custom_call.1
= control target key start
LH: loop header
LB: loop body
LE: loop exit
PB: predicated region body
PF: predicated region fallthrough
CT: control target
= control target key end

     0   :  { %s782_s0 = inlined_call_operand.vmem [shape: f32[8,512], index: 0, kind: input, shape index: {}]   ;;  %s783_s1 = inlined_call_operand.vmem [shape: f32[512,166], index: 1, kind: input, shape index: {}]   ;;  %s784_s2 = inlined_call_operand.vmem [shape: f32[1,166], index: 2, kind: input, shape index: {}]   ;;  %s785_s3 = inlined_call_operand.hbm [shape: f32[8,166], index: 3, kind: output, shape index: {}]  }
   0x1   :  { %v113_v0 = vld [vmem:[%s783_s1 + $0x2f0] sm:$0xff]  ;;  %v111_v2 = vld [vmem:[%s783_s1 + $0x2e0] sm:$0xff]  ;;  %v114_v62 = vld [vmem:[%s783_s1 + $0x2f8] sm:$0xff] }
   0x2   :  { %v49_v1 = vld [vmem:[%s783_s1 + $0xf0] sm:$0xff]  ;;  %193 = vmatpush.msra.mxu2 %v113_v0  ;;  %v47_v4 = vld [vmem:[%s783_s1 + $0xe0] sm:$0xff]  ;;  %v50_v0 = vld [vmem:[%s783_s1 + $0xf8] sm:$0xff] }
   0x3   :  { %153 = vmatpush.msra.mxu0 %v49_v1  ;;  %v145_v3 = vld [vmem:[%s783_s1 + $0x3f0] sm:$0xff]  ;;  %v143_v7 = vld [vmem:[%s783_s1 + $0x3e0] sm:$0xff]  ;;  %v146_v1 = vld [vmem:[%s783_s1 + $0x3f8] sm:$0xff] }
   0x4   :  { %v81_v5 = vld [vmem:[%s783_s1 + $0x1f0] sm:$0xff]  ;;  %213 = vmatpush.msra.mxu3 %v145_v3  ;;  %194 = vmatpush.msra.mxu2 %v111_v2  ;;  %v79_v9 = vld [vmem:[%s783_s1 + $0x1e0] sm:$0xff]  ;;  %v112_v2 = vld [vmem:[%s783_s1 + $0x2e8] sm:$0xff] }
   0x5   :  { %173 = vmatpush.msra.mxu1 %v81_v5  ;;  %v109_v6 = vld [vmem:[%s783_s1 + $0x2d0] sm:$0xff]  ;;  %154 = vmatpush.msra.mxu0 %v47_v4  ;;  %v107_v11 = vld [vmem:[%s783_s1 + $0x2c0] sm:$0xff]  ;;  %v48_v4 = vld [vmem:[%s783_s1 + $0xe8] sm:$0xff] }
   0x6   :  { %v45_v8 = vld [vmem:[%s783_s1 + $0xd0] sm:$0xff]  ;;  %214 = vmatpush.msra.mxu3 %v143_v7  ;;  %v43_v12 = vld [vmem:[%s783_s1 + $0xc0] sm:$0xff]  ;;  %195 = vmatpush.msra.mxu2 %v109_v6  ;;  %v82_v5 = vld [vmem:[%s783_s1 + $0x1f8] sm:$0xff] }
   0x7   :  { %v141_v10 = vld [vmem:[%s783_s1 + $0x3d0] sm:$0xff]  ;;  %174 = vmatpush.msra.mxu1 %v79_v9  ;;  %155 = vmatpush.msra.mxu0 %v45_v8  ;;  %v139_v14 = vld [vmem:[%s783_s1 + $0x3c0] sm:$0xff]  ;;  %v110_v6 = vld [vmem:[%s783_s1 + $0x2d8] sm:$0xff] }
   0x8   :  { %v77_v13 = vld [vmem:[%s783_s1 + $0x1d0] sm:$0xff]  ;;  %v75_v15 = vld [vmem:[%s783_s1 + $0x1c0] sm:$0xff]  ;;  %215 = vmatpush.msra.mxu3 %v141_v10  ;;  %196 = vmatpush.msra.mxu2 %v107_v11  ;;  %v144_v7 = vld [vmem:[%s783_s1 + $0x3e8] sm:$0xff] }
   0x9   :  { %175 = vmatpush.msra.mxu1 %v77_v13  ;;  %v105_v16 = vld [vmem:[%s783_s1 + $0x2b0] sm:$0xff]  ;;  %156 = vmatpush.msra.mxu0 %v43_v12  ;;  %v103_v20 = vld [vmem:[%s783_s1 + $0x2a0] sm:$0xff]  ;;  %v46_v8 = vld [vmem:[%s783_s1 + $0xd8] sm:$0xff] }
   0xa   :  { %v41_v17 = vld [vmem:[%s783_s1 + $0xb0] sm:$0xff]  ;;  %216 = vmatpush.msra.mxu3 %v139_v14  ;;  %v39_v21 = vld [vmem:[%s783_s1 + $0xa0] sm:$0xff]  ;;  %197 = vmatpush.msra.mxu2 %v105_v16  ;;  %v80_v9 = vld [vmem:[%s783_s1 + $0x1e8] sm:$0xff] }
   0xb   :  { %v137_v18 = vld [vmem:[%s783_s1 + $0x3b0] sm:$0xff]  ;;  %176 = vmatpush.msra.mxu1 %v75_v15  ;;  %157 = vmatpush.msra.mxu0 %v41_v17  ;;  %v135_v22 = vld [vmem:[%s783_s1 + $0x3a0] sm:$0xff]  ;;  %v108_v10 = vld [vmem:[%s783_s1 + $0x2c8] sm:$0xff] }
   0xc   :  { %v73_v19 = vld [vmem:[%s783_s1 + $0x1b0] sm:$0xff]  ;;  %v71_v23 = vld [vmem:[%s783_s1 + $0x1a0] sm:$0xff]  ;;  %217 = vmatpush.msra.mxu3 %v137_v18  ;;  %198 = vmatpush.msra.mxu2 %v103_v20  ;;  %v142_v11 = vld [vmem:[%s783_s1 + $0x3d8] sm:$0xff] }
   0xd   :  { %177 = vmatpush.msra.mxu1 %v73_v19  ;;  %v101_v24 = vld [vmem:[%s783_s1 + $0x290] sm:$0xff]  ;;  %158 = vmatpush.msra.mxu0 %v39_v21  ;;  %v99_v28 = vld [vmem:[%s783_s1 + $0x280] sm:$0xff]  ;;  %v44_v12 = vld [vmem:[%s783_s1 + $0xc8] sm:$0xff] }
   0xe   :  { %v37_v25 = vld [vmem:[%s783_s1 + $0x90] sm:$0xff]  ;;  %218 = vmatpush.msra.mxu3 %v135_v22  ;;  %v35_v29 = vld [vmem:[%s783_s1 + $0x80] sm:$0xff]  ;;  %199 = vmatpush.msra.mxu2 %v101_v24  ;;  %v78_v13 = vld [vmem:[%s783_s1 + $0x1d8] sm:$0xff] }
   0xf   :  { %v133_v26 = vld [vmem:[%s783_s1 + $0x390] sm:$0xff]  ;;  %178 = vmatpush.msra.mxu1 %v71_v23  ;;  %159 = vmatpush.msra.mxu0 %v37_v25  ;;  %v131_v30 = vld [vmem:[%s783_s1 + $0x380] sm:$0xff]  ;;  %v106_v14 = vld [vmem:[%s783_s1 + $0x2b8] sm:$0xff] }
  0x10   :  { %v69_v27 = vld [vmem:[%s783_s1 + $0x190] sm:$0xff]  ;;  %v67_v31 = vld [vmem:[%s783_s1 + $0x180] sm:$0xff]  ;;  %219 = vmatpush.msra.mxu3 %v133_v26  ;;  %200 = vmatpush.msra.mxu2 %v99_v28  ;;  %v140_v15 = vld [vmem:[%s783_s1 + $0x3c8] sm:$0xff] }
  0x11   :  { %179 = vmatpush.msra.mxu1 %v69_v27  ;;  %v97_v32 = vld [vmem:[%s783_s1 + $0x270] sm:$0xff]  ;;  %160 = vmatpush.msra.mxu0 %v35_v29  ;;  %v95_v36 = vld [vmem:[%s783_s1 + $0x260] sm:$0xff]  ;;  %v42_v16 = vld [vmem:[%s783_s1 + $0xb8] sm:$0xff] }
  0x12   :  { %v33_v33 = vld [vmem:[%s783_s1 + $0x70] sm:$0xff]  ;;  %220 = vmatpush.msra.mxu3 %v131_v30  ;;  %v31_v37 = vld [vmem:[%s783_s1 + $0x60] sm:$0xff]  ;;  %201 = vmatpush.msra.mxu2 %v97_v32  ;;  %v76_v17 = vld [vmem:[%s783_s1 + $0x1c8] sm:$0xff] }
  0x13   :  { %v129_v34 = vld [vmem:[%s783_s1 + $0x370] sm:$0xff]  ;;  %180 = vmatpush.msra.mxu1 %v67_v31  ;;  %161 = vmatpush.msra.mxu0 %v33_v33  ;;  %v127_v38 = vld [vmem:[%s783_s1 + $0x360] sm:$0xff]  ;;  %v104_v18 = vld [vmem:[%s783_s1 + $0x2a8] sm:$0xff] }
  0x14   :  { %v65_v35 = vld [vmem:[%s783_s1 + $0x170] sm:$0xff]  ;;  %v63_v39 = vld [vmem:[%s783_s1 + $0x160] sm:$0xff]  ;;  %221 = vmatpush.msra.mxu3 %v129_v34  ;;  %202 = vmatpush.msra.mxu2 %v95_v36  ;;  %v138_v19 = vld [vmem:[%s783_s1 + $0x3b8] sm:$0xff] }
  0x15   :  { %181 = vmatpush.msra.mxu1 %v65_v35  ;;  %v93_v40 = vld [vmem:[%s783_s1 + $0x250] sm:$0xff]  ;;  %162 = vmatpush.msra.mxu0 %v31_v37  ;;  %v91_v44 = vld [vmem:[%s783_s1 + $0x240] sm:$0xff]  ;;  %v40_v20 = vld [vmem:[%s783_s1 + $0xa8] sm:$0xff] }
  0x16   :  { %v29_v41 = vld [vmem:[%s783_s1 + $0x50] sm:$0xff]  ;;  %222 = vmatpush.msra.mxu3 %v127_v38  ;;  %v27_v45 = vld [vmem:[%s783_s1 + $0x40] sm:$0xff]  ;;  %203 = vmatpush.msra.mxu2 %v93_v40  ;;  %v74_v21 = vld [vmem:[%s783_s1 + $0x1b8] sm:$0xff] }
  0x17   :  { %v125_v42 = vld [vmem:[%s783_s1 + $0x350] sm:$0xff]  ;;  %182 = vmatpush.msra.mxu1 %v63_v39  ;;  %163 = vmatpush.msra.mxu0 %v29_v41  ;;  %v123_v46 = vld [vmem:[%s783_s1 + $0x340] sm:$0xff]  ;;  %v102_v22 = vld [vmem:[%s783_s1 + $0x298] sm:$0xff] }
  0x18   :  { %v61_v43 = vld [vmem:[%s783_s1 + $0x150] sm:$0xff]  ;;  %v59_v47 = vld [vmem:[%s783_s1 + $0x140] sm:$0xff]  ;;  %223 = vmatpush.msra.mxu3 %v125_v42  ;;  %204 = vmatpush.msra.mxu2 %v91_v44  ;;  %v136_v23 = vld [vmem:[%s783_s1 + $0x3a8] sm:$0xff] }
  0x19   :  { %183 = vmatpush.msra.mxu1 %v61_v43  ;;  %v89_v48 = vld [vmem:[%s783_s1 + $0x230] sm:$0xff]  ;;  %164 = vmatpush.msra.mxu0 %v27_v45  ;;  %v87_v52 = vld [vmem:[%s783_s1 + $0x220] sm:$0xff]  ;;  %v38_v24 = vld [vmem:[%s783_s1 + $0x98] sm:$0xff] }
  0x1a   :  { %v25_v49 = vld [vmem:[%s783_s1 + $0x30] sm:$0xff]  ;;  %224 = vmatpush.msra.mxu3 %v123_v46  ;;  %v23_v53 = vld [vmem:[%s783_s1 + $0x20] sm:$0xff]  ;;  %205 = vmatpush.msra.mxu2 %v89_v48  ;;  %v72_v25 = vld [vmem:[%s783_s1 + $0x1a8] sm:$0xff] }
  0x1b   :  { %v121_v50 = vld [vmem:[%s783_s1 + $0x330] sm:$0xff]  ;;  %184 = vmatpush.msra.mxu1 %v59_v47  ;;  %165 = vmatpush.msra.mxu0 %v25_v49  ;;  %v119_v54 = vld [vmem:[%s783_s1 + $0x320] sm:$0xff]  ;;  %v100_v26 = vld [vmem:[%s783_s1 + $0x288] sm:$0xff] }
  0x1c   :  { %v57_v51 = vld [vmem:[%s783_s1 + $0x130] sm:$0xff]  ;;  %v55_v55 = vld [vmem:[%s783_s1 + $0x120] sm:$0xff]  ;;  %225 = vmatpush.msra.mxu3 %v121_v50  ;;  %206 = vmatpush.msra.mxu2 %v87_v52  ;;  %v134_v27 = vld [vmem:[%s783_s1 + $0x398] sm:$0xff] }
  0x1d   :  { %185 = vmatpush.msra.mxu1 %v57_v51  ;;  %v85_v56 = vld [vmem:[%s783_s1 + $0x210] sm:$0xff]  ;;  %166 = vmatpush.msra.mxu0 %v23_v53  ;;  %v83_v60 = vld [vmem:[%s783_s1 + $0x200] sm:$0xff]  ;;  %v36_v28 = vld [vmem:[%s783_s1 + $0x88] sm:$0xff] }
  0x1e   :  { %v21_v57 = vld [vmem:[%s783_s1 + $0x10] sm:$0xff]  ;;  %226 = vmatpush.msra.mxu3 %v119_v54  ;;  %v19_v61 = vld [vmem:[%s783_s1] sm:$0xff]  ;;  %207 = vmatpush.msra.mxu2 %v85_v56  ;;  %v70_v29 = vld [vmem:[%s783_s1 + $0x198] sm:$0xff] }
  0x1f   :  { %v117_v58 = vld [vmem:[%s783_s1 + $0x310] sm:$0xff]  ;;  %186 = vmatpush.msra.mxu1 %v55_v55  ;;  %167 = vmatpush.msra.mxu0 %v21_v57  ;;  %v115_v63 = vld [vmem:[%s783_s1 + $0x300] sm:$0xff] }
  0x20   :  { %v53_v59 = vld [vmem:[%s783_s1 + $0x110] sm:$0xff]  ;;  %227 = vmatpush.msra.mxu3 %v117_v58  ;;  %208 = vmatpush.msra.mxu2 %v83_v60  ;;  %v51_v3 = vld [vmem:[%s783_s1 + $0x100] sm:$0xff] }
  0x21   :  { %187 = vmatpush.msra.mxu1 %v53_v59  ;;  %168 = vmatpush.msra.mxu0 %v19_v61 }
  0x22   :  { %273 = vmatpush.msrb.mxu2 %v114_v62  ;;  %228 = vmatpush.msra.mxu3 %v115_v63 }
  0x23   :  { %233 = vmatpush.msrb.mxu0 %v50_v0  ;;  %188 = vmatpush.msra.mxu1 %v51_v3 }
  0x24   :  { %293 = vmatpush.msrb.mxu3 %v146_v1  ;;  %274 = vmatpush.msrb.mxu2 %v112_v2 }
  0x25   :  { %234 = vmatpush.msrb.mxu0 %v48_v4  ;;  %253 = vmatpush.msrb.mxu1 %v82_v5 }
  0x26   :  { %275 = vmatpush.msrb.mxu2 %v110_v6  ;;  %294 = vmatpush.msrb.mxu3 %v144_v7 }
  0x27   :  { %235 = vmatpush.msrb.mxu0 %v46_v8  ;;  %254 = vmatpush.msrb.mxu1 %v80_v9 }
  0x28   :  { %276 = vmatpush.msrb.mxu2 %v108_v10  ;;  %295 = vmatpush.msrb.mxu3 %v142_v11 }
  0x29   :  { %236 = vmatpush.msrb.mxu0 %v44_v12  ;;  %255 = vmatpush.msrb.mxu1 %v78_v13 }
  0x2a   :  { %277 = vmatpush.msrb.mxu2 %v106_v14  ;;  %296 = vmatpush.msrb.mxu3 %v140_v15 }
  0x2b   :  { %237 = vmatpush.msrb.mxu0 %v42_v16  ;;  %256 = vmatpush.msrb.mxu1 %v76_v17 }
  0x2c   :  { %278 = vmatpush.msrb.mxu2 %v104_v18  ;;  %297 = vmatpush.msrb.mxu3 %v138_v19 }
  0x2d   :  { %238 = vmatpush.msrb.mxu0 %v40_v20  ;;  %257 = vmatpush.msrb.mxu1 %v74_v21 }
  0x2e   :  { %279 = vmatpush.msrb.mxu2 %v102_v22  ;;  %298 = vmatpush.msrb.mxu3 %v136_v23 }
  0x2f   :  { %8 = vsyncpa [#allocation3], 0  ;;  %239 = vmatpush.msrb.mxu0 %v38_v24  ;;  %258 = vmatpush.msrb.mxu1 %v72_v25  ;;  %v98_v30 = vld [vmem:[%s783_s1 + $0x278] sm:$0xff]  ;;  %v132_v31 = vld [vmem:[%s783_s1 + $0x388] sm:$0xff]  ;;  %s323_s9 = sshll.u32 %s785_s3, 4  ;;  %vm314_vm0 = vcmask 310272   ;;  %s324_s9 = int_to_ptr.hbm [resolvable:$true] %s323_s9 }
  0x30   :  { %280 = vmatpush.msrb.mxu2 %v100_v26  ;;  %299 = vmatpush.msrb.mxu3 %v134_v27  ;;  %v34_v32 = vld [vmem:[%s783_s1 + $0x78] sm:$0xff]  ;;  %v68_v33 = vld [vmem:[%s783_s1 + $0x188] sm:$0xff]  ;;  %v17_v44 = vld [vmem:[%s782_s0 + $0x10] sm:$0xff] }
  0x31   :  { %240 = vmatpush.msrb.mxu0 %v36_v28  ;;  %259 = vmatpush.msrb.mxu1 %v70_v29  ;;  %v96_v34 = vld [vmem:[%s783_s1 + $0x268] sm:$0xff]  ;;  %v130_v35 = vld [vmem:[%s783_s1 + $0x378] sm:$0xff]  ;;  %v15_v49 = vld [vmem:[%s782_s0] sm:$0xff] }
  0x32   :  { %281 = vmatpush.msrb.mxu2 %v98_v30  ;;  %300 = vmatpush.msrb.mxu3 %v132_v31  ;;  %v32_v36 = vld [vmem:[%s783_s1 + $0x68] sm:$0xff]  ;;  %v66_v37 = vld [vmem:[%s783_s1 + $0x178] sm:$0xff]  ;;  %v147_v4 = vld [vmem:[%s784_s2] sm:$0x3] }
  0x33   :  { %241 = vmatpush.msrb.mxu0 %v34_v32  ;;  %260 = vmatpush.msrb.mxu1 %v68_v33  ;;  %v94_v38 = vld [vmem:[%s783_s1 + $0x258] sm:$0xff]  ;;  %v128_v39 = vld [vmem:[%s783_s1 + $0x368] sm:$0xff]  ;;  %v149_v5 = vperm.slane %v147_v4, 0  ;;  %v150_v13 = vperm.slane %v147_v4, 1 }
  0x34   :  { %282 = vmatpush.msrb.mxu2 %v96_v34  ;;  %301 = vmatpush.msrb.mxu3 %v130_v35  ;;  %v30_v40 = vld [vmem:[%s783_s1 + $0x58] sm:$0xff]  ;;  %v64_v41 = vld [vmem:[%s783_s1 + $0x168] sm:$0xff] }
  0x35   :  { %242 = vmatpush.msrb.mxu0 %v32_v36  ;;  %261 = vmatpush.msrb.mxu1 %v66_v37  ;;  %v92_v42 = vld [vmem:[%s783_s1 + $0x248] sm:$0xff]  ;;  %v126_v43 = vld [vmem:[%s783_s1 + $0x358] sm:$0xff] }
  0x36   :  { %283 = vmatpush.msrb.mxu2 %v94_v38  ;;  %302 = vmatpush.msrb.mxu3 %v128_v39  ;;  %v28_v45 = vld [vmem:[%s783_s1 + $0x48] sm:$0xff]  ;;  %v62_v46 = vld [vmem:[%s783_s1 + $0x158] sm:$0xff] }
  0x37   :  { %243 = vmatpush.msrb.mxu0 %v30_v40  ;;  %262 = vmatpush.msrb.mxu1 %v64_v41  ;;  %v90_v47 = vld [vmem:[%s783_s1 + $0x238] sm:$0xff]  ;;  %v124_v48 = vld [vmem:[%s783_s1 + $0x348] sm:$0xff] }
  0x38   :  { %284 = vmatpush.msrb.mxu2 %v92_v42  ;;  %303 = vmatpush.msrb.mxu3 %v126_v43  ;;  %v18_v50 = vld [vmem:[%s782_s0 + $0x18] sm:$0xff]  ;;  %v60_v52 = vld [vmem:[%s783_s1 + $0x148] sm:$0xff] }
  0x39   :  { %209 = vmatmul.f32.vlgmr.msra.gmra.mxu2 %v17_v44  ;;  %244 = vmatpush.msrb.mxu0 %v28_v45  ;;  %v26_v51 = vld [vmem:[%s783_s1 + $0x38] sm:$0xff]  ;;  %v88_v53 = vld [vmem:[%s783_s1 + $0x228] sm:$0xff] }
  0x3a   :  { %263 = vmatpush.msrb.mxu1 %v62_v46  ;;  %285 = vmatpush.msrb.mxu2 %v90_v47  ;;  %v122_v54 = vld [vmem:[%s783_s1 + $0x338] sm:$0xff]  ;;  %v16_v55 = vld [vmem:[%s782_s0 + $0x8] sm:$0xff] }
  0x3b   :  { %304 = vmatpush.msrb.mxu3 %v124_v48  ;;  %169 = vmatmul.f32.vlgmr.msra.gmra.mxu0 %v15_v49  ;;  %v24_v56 = vld [vmem:[%s783_s1 + $0x28] sm:$0xff]  ;;  %v58_v57 = vld [vmem:[%s783_s1 + $0x138] sm:$0xff] }
  0x3c   :  { %229 = vmatmul.f32.vlgmr.msra.gmra.mxu3 %v18_v50  ;;  %245 = vmatpush.msrb.mxu0 %v26_v51  ;;  %v86_v58 = vld [vmem:[%s783_s1 + $0x218] sm:$0xff]  ;;  %v120_v59 = vld [vmem:[%s783_s1 + $0x328] sm:$0xff] }
  0x3d   :  { %264 = vmatpush.msrb.mxu1 %v60_v52  ;;  %286 = vmatpush.msrb.mxu2 %v88_v53  ;;  %v22_v60 = vld [vmem:[%s783_s1 + $0x18] sm:$0xff]  ;;  %v56_v61 = vld [vmem:[%s783_s1 + $0x128] sm:$0xff] }
  0x3e   :  { %305 = vmatpush.msrb.mxu3 %v122_v54  ;;  %189 = vmatmul.f32.vlgmr.msra.gmra.mxu1 %v16_v55  ;;  %v84_v62 = vld [vmem:[%s783_s1 + $0x208] sm:$0xff]  ;;  %v118_v63 = vld [vmem:[%s783_s1 + $0x318] sm:$0xff] }
  0x3f   :  { %246 = vmatpush.msrb.mxu0 %v24_v56  ;;  %265 = vmatpush.msrb.mxu1 %v58_v57  ;;  %v20_v0 = vld [vmem:[%s783_s1 + $0x8] sm:$0xff]  ;;  %v54_v1 = vld [vmem:[%s783_s1 + $0x118] sm:$0xff] }
  0x40   :  { %287 = vmatpush.msrb.mxu2 %v86_v58  ;;  %306 = vmatpush.msrb.mxu3 %v120_v59  ;;  %v116_v2 = vld [vmem:[%s783_s1 + $0x308] sm:$0xff] }
  0x41   :  { %247 = vmatpush.msrb.mxu0 %v22_v60  ;;  %266 = vmatpush.msrb.mxu1 %v56_v61  ;;  %v52_v3 = vld [vmem:[%s783_s1 + $0x108] sm:$0xff]  ;;  %s359_s1 = smov [#allocation2]  }
  0x42   :  { %288 = vmatpush.msrb.mxu2 %v84_v62  ;;  %307 = vmatpush.msrb.mxu3 %v118_v63  ;;  %s321_s7 = sshll.u32 %s359_s1, 4  ;;  %s322_s7 = int_to_ptr.vmem [resolvable:$true] %s321_s7 }
  0x43   :  { %289 = vmatmul.f32.vlgmr.msrb.gmra.mxu2 %v17_v44  ;;  %248 = vmatpush.msrb.mxu0 %v20_v0 }
  0x44   :  { %267 = vmatpush.msrb.mxu1 %v54_v1  ;;  %308 = vmatpush.msrb.mxu3 %v116_v2 }
  0x45   :  { %249 = vmatmul.f32.vlgmr.msrb.gmra.mxu0 %v15_v49  ;;  %309 = vmatmul.f32.vlgmr.msrb.gmra.mxu3 %v18_v50 }
  0x46   :  { %268 = vmatpush.msrb.mxu1 %v52_v3 }
  0x47   :  { %269 = vmatmul.f32.vlgmr.msrb.gmra.mxu1 %v16_v55 }
  0xb8   :  { %v170_v6 = vpop.f32.mrf.mxu0 }
  0xb9   :  { %v171_v7 = vadd.f32 %v170_v6, %v149_v5 }
  0xbb   :  { %v190_v8 = vpop.f32.mrf.mxu1 }
  0xbc   :  { %v191_v9 = vadd.f32 %v190_v8, %v171_v7  ;;  %v210_v10 = vpop.f32.mrf.mxu2 }
  0xbe   :  { %v211_v11 = vadd.f32 %v210_v10, %v191_v9 }
  0xbf   :  { %v230_v12 = vpop.f32.mrf.mxu3 }
  0xc0   :  { %v231_v14 = vadd.f32 %v230_v12, %v211_v11 }
  0xc2   :  { %313 = vst [vmem:[#allocation2] sm:$0xff] %v231_v14  ;;  %v250_v15 = vpop.f32.mrf.mxu0 }
  0xc3   :  { %v251_v16 = vadd.f32 %v250_v15, %v150_v13 }
  0xc4   :  { %v270_v17 = vpop.f32.mrf.mxu1 }
  0xc5   :  { %v271_v18 = vadd.f32 %v270_v17, %v251_v16 }
  0xc6   :  { %v290_v19 = vpop.f32.mrf.mxu2 }
  0xc7   :  { %v291_v20 = vadd.f32 %v290_v19, %v271_v18 }
  0xc8   :  { %v310_v21 = vpop.f32.mrf.mxu3 }
  0xc9   :  { %v311_v22 = vadd.f32 %v310_v21, %v291_v20 }
  0xcb   :  { %315 = vst.msk [vmem:[#allocation2 + $0x8] sm:$0xff] %vm314_vm0, %v311_v22 }
  0xcc   :  { %326 = dma.vmem_to_hbm [thread:$0]  %s322_s7, 256, %s324_s9, [#allocation3]  }
  0xcd   :  { %357 = dma.done.wait [#allocation3], 256  }
  0xce   :  { %358 = vsyncadd [#allocation3], 4294967040 }
  0xcf   :  { %331 = vsyncpa [#allocation3], 1 }

</bundles_post_ra>
